<compile_context>
chip_gen: v5e
topology: v5e:2x2
jax: 0.10.0
libtpu: 0.0.40
codegen_flags: <defaults>
</compile_context>

<pallas_src>
import functools

import jax
import jax.numpy as jnp
from jax.experimental import pallas as pl
from jax.experimental.pallas import tpu as pltpu


def _round_up(a: int, m: int) -> int:
    return (a + m - 1) // m * m


def _variational_kernel(x_ref, w_ref, b_ref, eps_ref, z_ref, kl_ref):
    # Single fused MXU matmul (bf16 inputs, f32 accumulation): y = [mu | logvar]
    y = jnp.dot(x_ref[...], w_ref[...],
                preferred_element_type=jnp.float32) + b_ref[...]
    d = y.shape[-1] // 2
    mu = y[:, :d]
    logvar = y[:, d:]

    # Reparameterization: z = mu + eps * exp(0.5 * logvar)   (only EUP op: one exp)
    std = jnp.exp(0.5 * logvar)
    z_ref[...] = (mu + eps_ref[...] * std).astype(z_ref.dtype)

    # Per-row KL: -0.5 * sum(1 + logvar - mu^2 - exp(logvar), axis=-1)
    # exp(logvar) == std*std  -> VPU multiply instead of a second transcendental.
    kl_ref[...] = -0.5 * jnp.sum(1.0 + logvar - mu * mu - std * std,
                                 axis=-1, keepdims=True)


@functools.partial(jax.jit, static_argnames=("block_b",))
def variational_layer(x, w_mu, b_mu, w_logvar, b_logvar, eps, *, block_b: int = 128):
    """Pallas forward of VariationalLayer. Returns (z, kl_div_scalar)."""
    B, in_dim = x.shape
    d_out = w_mu.shape[1]

    # Fuse the two linear layers into one wide matmul (weights stored (in, out),
    # i.e. nn.Linear's W.T, so the kernel computes x @ W + b).
    w = jnp.concatenate([w_mu, w_logvar], axis=1).astype(jnp.bfloat16)     # (in, 2*Dout)
    bias = jnp.concatenate([b_mu.reshape(1, -1), b_logvar.reshape(1, -1)],
                           axis=1).astype(jnp.float32)                     # (1, 2*Dout)

    # Batch tiling: TB rows per grid step; weights/bias stay resident in VMEM.
    tb = min(block_b, _round_up(B, 8))
    num_tiles = pl.cdiv(B, tb)
    b_pad = num_tiles * tb

    x_p = x.astype(jnp.bfloat16)
    eps_p = eps.astype(jnp.float32)
    if b_pad != B:
        x_p = jnp.pad(x_p, ((0, b_pad - B), (0, 0)))
        eps_p = jnp.pad(eps_p, ((0, b_pad - B), (0, 0)))

    z_pad, kl_rows = pl.pallas_call(
        _variational_kernel,
        out_shape=(
            jax.ShapeDtypeStruct((b_pad, d_out), jnp.float32),
            jax.ShapeDtypeStruct((b_pad, 1), jnp.float32),
        ),
        grid=(num_tiles,),
        in_specs=[
            pl.BlockSpec((tb, in_dim), lambda i: (i, 0)),          # x tile
            pl.BlockSpec((in_dim, 2 * d_out), lambda i: (0, 0)),   # fused W (resident)
            pl.BlockSpec((1, 2 * d_out), lambda i: (0, 0)),        # fused bias (resident)
            pl.BlockSpec((tb, d_out), lambda i: (i, 0)),           # eps tile
        ],
        out_specs=(
            pl.BlockSpec((tb, d_out), lambda i: (i, 0)),           # z tile
            pl.BlockSpec((tb, 1), lambda i: (i, 0)),               # per-row KL
        ),
        compiler_params=pltpu.CompilerParams(
            dimension_semantics=("parallel",)),                    # megacore-shardable
    )(x_p, w, bias, eps_p)

    z = z_pad[:B]
    kl = jnp.mean(kl_rows[:B, 0])   # batch mean over true B only, outside the kernel
    return z, kl


if __name__ == "__main__":
    B, IN_DIM, OUT_DIM = 8, 32, 32

    key = jax.random.PRNGKey(0)
    kx, kwm, kbm, kwl, kbl, keps = jax.random.split(key, 6)

    # Deterministic parameter init (mimics nn.Linear uniform(-1/sqrt(in), 1/sqrt(in)))
    bound = 1.0 / (IN_DIM ** 0.5)
    w_mu = jax.random.uniform(kwm, (IN_DIM, OUT_DIM), jnp.float32, -bound, bound)
    b_mu = jax.random.uniform(kbm, (1, OUT_DIM), jnp.float32, -bound, bound)
    w_logvar = jax.random.uniform(kwl, (IN_DIM, OUT_DIM), jnp.float32, -bound, bound)
    b_logvar = jax.random.uniform(kbl, (1, OUT_DIM), jnp.float32, -bound, bound)

    x = jax.random.normal(kx, (B, IN_DIM), jnp.float32)
    # eps = torch.randn_like(std): standard-normal noise, generated as glue in JAX
    eps = jax.random.normal(keps, (B, OUT_DIM), jnp.float32)

    z, kl = variational_layer(x, w_mu, b_mu, w_logvar, b_logvar, eps)
    jax.block_until_ready((z, kl))

    # Pure-JAX reference using the same bf16-quantized matmul inputs the kernel uses.
    xb = x.astype(jnp.bfloat16).astype(jnp.float32)
    wmb = w_mu.astype(jnp.bfloat16).astype(jnp.float32)
    wlb = w_logvar.astype(jnp.bfloat16).astype(jnp.float32)
    mu_ref = xb @ wmb + b_mu
    lv_ref = xb @ wlb + b_logvar
    z_ref = mu_ref + eps * jnp.exp(0.5 * lv_ref)
    kl_ref = jnp.mean(-0.5 * jnp.sum(1.0 + lv_ref - mu_ref ** 2 - jnp.exp(lv_ref), axis=-1))

    assert z.shape == (B, OUT_DIM)
    assert jnp.allclose(z, z_ref, atol=1e-4, rtol=1e-4)
    assert jnp.allclose(kl, kl_ref, atol=1e-4, rtol=1e-4)

    print("KERNEL_OK")
</pallas_src>

<mosaic_0001>
module attributes {stable_mosaic.version = 11 : i64} {
  func.func @_variational_kernel(%arg0: i32, %arg1: memref<8x32xbf16, #tpu.memory_space<vmem>>, %arg2: memref<32x64xbf16, #tpu.memory_space<vmem>>, %arg3: memref<1x64xf32, #tpu.memory_space<vmem>>, %arg4: memref<8x32xf32, #tpu.memory_space<vmem>>, %arg5: memref<8x32xf32, #tpu.memory_space<vmem>>, %arg6: memref<8x1xf32, #tpu.memory_space<vmem>>) attributes {dimension_semantics = [#tpu.dimension_semantics<parallel>], iteration_bounds = array<i64: 1>, scalar_prefetch = 0 : i64, scratch_operands = 0 : i64, tpu.core_type = #tpu.core_type<tc>, window_params = [{transform_indices = @transform_0, window_bounds = array<i64: 8, 32>}, {pipeline_mode = #tpu.pipeline_mode<synchronous>, transform_indices = @transform_1, window_bounds = array<i64: 32, 64>}, {pipeline_mode = #tpu.pipeline_mode<synchronous>, transform_indices = @transform_2, window_bounds = array<i64: 1, 64>}, {transform_indices = @transform_3, window_bounds = array<i64: 8, 32>}, {transform_indices = @transform_4, window_bounds = array<i64: 8, 32>}, {transform_indices = @transform_5, window_bounds = array<i64: 8, 1>}]} {
    %c0 = arith.constant 0 : index
    %c0_0 = arith.constant 0 : index
    %0 = vector.load %arg1[%c0, %c0_0] : memref<8x32xbf16, #tpu.memory_space<vmem>>, vector<8x32xbf16>
    %c0_1 = arith.constant 0 : index
    %c0_2 = arith.constant 0 : index
    %1 = vector.load %arg2[%c0_1, %c0_2] : memref<32x64xbf16, #tpu.memory_space<vmem>>, vector<32x64xbf16>
    %cst = arith.constant dense<0.000000e+00> : vector<8x64xf32>
    %2 = tpu.matmul %0, %1, %cst {dimension_numbers = #tpu.dot_dimension_numbers<[1], [0], [0], [1], [0, 0, 1, 1], [], []>} : vector<8x32xbf16>, vector<32x64xbf16>, vector<8x64xf32> -> vector<8x64xf32>
    %c0_3 = arith.constant 0 : index
    %c0_4 = arith.constant 0 : index
    %3 = vector.load %arg3[%c0_3, %c0_4] : memref<1x64xf32, #tpu.memory_space<vmem>>, vector<1x64xf32>
    %4 = vector.broadcast %3 : vector<1x64xf32> to vector<8x64xf32>
    %5 = arith.addf %2, %4 : vector<8x64xf32>
    %6 = vector.extract_strided_slice %5 {offsets = [0, 0], sizes = [8, 32], strides = [1, 1]} : vector<8x64xf32> to vector<8x32xf32>
    %7 = vector.extract_strided_slice %5 {offsets = [0, 32], sizes = [8, 32], strides = [1, 1]} : vector<8x64xf32> to vector<8x32xf32>
    %cst_5 = arith.constant 5.000000e-01 : f32
    %8 = vector.broadcast %cst_5 : f32 to vector<8x32xf32>
    %9 = arith.mulf %8, %7 : vector<8x32xf32>
    %10 = math.exp %9 : vector<8x32xf32>
    %c0_6 = arith.constant 0 : index
    %c0_7 = arith.constant 0 : index
    %11 = vector.load %arg4[%c0_6, %c0_7] : memref<8x32xf32, #tpu.memory_space<vmem>>, vector<8x32xf32>
    %12 = arith.mulf %11, %10 : vector<8x32xf32>
    %13 = arith.addf %6, %12 : vector<8x32xf32>
    %c0_8 = arith.constant 0 : index
    %c0_9 = arith.constant 0 : index
    %14 = vector.load %arg5[%c0_8, %c0_9] : memref<8x32xf32, #tpu.memory_space<vmem>>, vector<8x32xf32>
    tpu.vector_store %arg5[%c0_8, %c0_9], %13 {strides = array<i32>} : memref<8x32xf32, #tpu.memory_space<vmem>>, vector<8x32xf32>,
    %cst_10 = arith.constant 1.000000e+00 : f32
    %15 = vector.broadcast %cst_10 : f32 to vector<8x32xf32>
    %16 = arith.addf %15, %7 : vector<8x32xf32>
    %17 = arith.mulf %6, %6 : vector<8x32xf32>
    %18 = arith.subf %16, %17 : vector<8x32xf32>
    %19 = arith.mulf %10, %10 : vector<8x32xf32>
    %20 = arith.subf %18, %19 : vector<8x32xf32>
    %cst_11 = arith.constant dense<0.000000e+00> : vector<8xf32>
    %21 = vector.multi_reduction <add>, %20, %cst_11 [1] : vector<8x32xf32> to vector<8xf32>
    %22 = vector.shape_cast %21 : vector<8xf32> to vector<8x1xf32>
    %cst_12 = arith.constant -5.000000e-01 : f32
    %23 = vector.broadcast %cst_12 : f32 to vector<8x1xf32>
    %24 = arith.mulf %23, %22 : vector<8x1xf32>
    %c0_13 = arith.constant 0 : index
    %c0_14 = arith.constant 0 : index
    %25 = vector.load %arg6[%c0_13, %c0_14] : memref<8x1xf32, #tpu.memory_space<vmem>>, vector<8x1xf32>
    tpu.vector_store %arg6[%c0_13, %c0_14], %24 {strides = array<i32>} : memref<8x1xf32, #tpu.memory_space<vmem>>, vector<8x1xf32>,
    return
  }
  func.func @transform_0(%arg0: i32) -> (i32, i32) {
    %c0_i32 = arith.constant 0 : i32
    %c0_i32_0 = arith.constant 0 : i32
    return %arg0, %c0_i32 : i32, i32
  }
  func.func @transform_1(%arg0: i32) -> (i32, i32) {
    %c0_i32 = arith.constant 0 : i32
    %c0_i32_0 = arith.constant 0 : i32
    %c0_i32_1 = arith.constant 0 : i32
    return %c0_i32, %c0_i32_0 : i32, i32
  }
  func.func @transform_2(%arg0: i32) -> (i32, i32) {
    %c0_i32 = arith.constant 0 : i32
    %c0_i32_0 = arith.constant 0 : i32
    %c0_i32_1 = arith.constant 0 : i32
    return %c0_i32, %c0_i32_0 : i32, i32
  }
  func.func @transform_3(%arg0: i32) -> (i32, i32) {
    %c0_i32 = arith.constant 0 : i32
    %c0_i32_0 = arith.constant 0 : i32
    return %arg0, %c0_i32 : i32, i32
  }
  func.func @transform_4(%arg0: i32) -> (i32, i32) {
    %c0_i32 = arith.constant 0 : i32
    %c0_i32_0 = arith.constant 0 : i32
    return %arg0, %c0_i32 : i32, i32
  }
  func.func @transform_5(%arg0: i32) -> (i32, i32) {
    %c0_i32 = arith.constant 0 : i32
    %c0_i32_0 = arith.constant 0 : i32
    return %arg0, %c0_i32 : i32, i32
  }
}

</mosaic_0001>

<bundles_post_ra>
// kernel: variational_layer.1
= control target key start
LH: loop header
LB: loop body
LE: loop exit
PB: predicated region body
PF: predicated region fallthrough
CT: control target
= control target key end

     0   :  { %s209_s0 = inlined_call_operand.vmem [shape: bf16[8,32], index: 0, kind: input, shape index: {}]   ;;  %s210_s1 = inlined_call_operand.vmem [shape: bf16[32,64], index: 1, kind: input, shape index: {}]   ;;  %s211_s2 = inlined_call_operand.vmem [shape: f32[1,64], index: 2, kind: input, shape index: {}]   ;;  %s212_s3 = inlined_call_operand.vmem [shape: f32[8,32], index: 3, kind: input, shape index: {}]   ;;  %s213_s4 = inlined_call_operand.hbm [shape: f32[8,32], index: 4, kind: output, shape index: {0}]   ;;  %s214_s5 = inlined_call_operand.vmem [shape: f32[8,1], index: 5, kind: output, shape index: {1}]  }
   0x1   :  { %v119_v0 = vld [vmem:[%s210_s1 + $0x8] sm:$0xff] }
   0x2   :  { %11 = vsyncpa [#allocation3], 0  ;;  %52 = vmatpush.bf16.msra.mxu0 %v119_v0  ;;  %v118_v1 = vld [vmem:[%s210_s1] sm:$0xff]  ;;  %vm42_vm0 = vcmask 261120   ;;  %s152_s26 = smov 32   ;;  %s153_s1 = smov 96  }
   0x3   :  { %v21_v2 = vld [vmem:[%s209_s0] sm:$0xf]  ;;  %s154_s27 = smov [#allocation2]   ;;  %s96_s6 = sshll.u32 %s213_s4, 4  ;;  %vm87_vm1 = vcmask 7168   ;;  %s97_s6 = int_to_ptr.hbm [resolvable:$true] %s96_s6 }
   0x4   :  { %v123_v3 = vld [vmem:[%s211_s2] ss:$0 sm:$0xff]  ;;  %s94_s28 = sshll.u32 %s154_s27, 4  ;;  %s95_s28 = int_to_ptr.vmem [resolvable:$true] %s94_s28 }
   0x5   :  { %v62_v16 = vld [vmem:[%s212_s3] sm:$0xff] }
   0x6   :  { %53 = vmatpush.bf16.msra.mxu0 %v118_v1 }
   0x9   :  { %117 = vmatmul.msk.bf16.vlgmr.msra.gmra.mxu0 %vm42_vm0, %v21_v2 }
  0x86   :  { %v55_v4 = vpop.f32.mrf.mxu0 }
  0x87   :  { %v56_v5 = vadd.f32 %v123_v3, %v55_v4 }
  0x89   :  { %v71_v6 = vmul.f32 %v56_v5, %v56_v5  ;;  %v59_v7 = vmul.f32 0.5, %v56_v5  ;;  %v70_v11 = vadd.f32 1.0, %v56_v5 }
  0x8b   :  { %73 = vrot.lane.b32.xlu0 %v71_v6, %s152_s26  ;;  %v60_v8 = vmul.f32 1.442695, %v59_v7 }
  0x8d   :  { %124 = vpow2.f32 %v60_v8 }
  0x8e   :  { %v57_v9 = vpop.f32.mrf.mxu0 }
  0x93   :  { %v125_v10 = vpop.eup %124 }
  0x94   :  { %64 = vrot.lane.b32.xlu1 %v125_v10, %s153_s1  ;;  %v77_v14 = vmul.f32 %v125_v10, %v125_v10 }
  0xfd   :  { %v74_v12 = vpop.permute.xlu0 %73 }
  0xfe   :  { %v76_v13 = vsub.f32 %v70_v11, %v74_v12 }
 0x100   :  { %v78_v15 = vsub.f32 %v76_v13, %v77_v14 }
 0x102   :  { %80 = vrot.lane.b32.xlu0 %v78_v15, %s153_s1 }
 0x106   :  { %v65_v17 = vpop.permute.xlu1 %64 }
 0x107   :  { %v67_v18 = vmul.f32 %v65_v17, %v62_v16 }
 0x109   :  { %v68_v19 = vadd.f32 %v67_v18, %v56_v5 }
 0x10b   :  { %69 = vst.msk [vmem:[#allocation2] sm:$0xff] %vm42_vm0, %v68_v19 }
 0x10c   :  { %99 = dma.vmem_to_hbm [thread:$0]  %s95_s28, 128, %s97_s6, [#allocation3]  }
 0x174   :  { %v81_v20 = vpop.permute.xlu0 %80 }
 0x175   :  { %v83_v21 = vsel %vm42_vm0, %v81_v20, 0.0 }
 0x176   :  { %84 = vadd.xlane.f32.xlu1 %v83_v21 }
 0x1e9   :  { %v85_v22 = vpop.xlane.xlu1 %84 }
 0x1ea   :  { %v86_v23 = vmul.f32 -0.5, %v85_v22 }
 0x1ec   :  { %88 = vst.msk [vmem:[%s214_s5] sm:$0xff] %vm87_vm1, %v86_v23 }
 0x1ed   :  { %150 = dma.done.wait [#allocation3], 128  }
 0x1ee   :  { %151 = vsyncadd [#allocation3], 4294967168 }
 0x1ef   :  { %108 = vsyncpa [#allocation3], 1 }

</bundles_post_ra>
